<compile_context>
chip_gen: v7x
topology: tpu7x:2x2x1
jax: 0.10.0
libtpu: 0.0.40
codegen_flags: <defaults>
</compile_context>

<pallas_src>
import jax
import jax.numpy as jnp
from jax.experimental import pallas as pl
from jax.experimental.pallas import tpu as pltpu

IN_DIM = 2
HIDDEN = 64
LANE = 128
TILE_CAP = 8192  # max batch columns per grid step (VMEM-safe on v5e/v6e/v7x)


def _round_up(n, m):
    return pl.cdiv(n, m) * m


def mlp_kernel(xt_ref, w1_ref, b1_ref, w2_ref, b2_ref, w3_ref, b3_ref, o_ref):
    # xt_ref : (2, TILE_B) f32   transposed input tile (batch on lanes)
    # w1_ref : (64, 2)     f32   layer1.weight (PyTorch layout)
    # b1_ref : (64, 1)     f32   layer1.bias as a column
    # w2_ref : (64, 64)    bf16  layer2.weight (explicit MXU operand dtype)
    # b2_ref : (64, 1)     f32   layer2.bias as a column
    # w3_ref : (64, 1)     f32   layer3.weight as a column
    # b3_ref : (1, 1)      f32   layer3.bias scalar (SMEM)
    # o_ref  : (1, TILE_B) f32   transposed output tile (lane-dense)
    xt = xt_ref[...]
    w1 = w1_ref[...]

    # Layer 1 on the VPU: K=2 contraction as two broadcast FMAs (exact f32).
    h1 = (w1[:, 0:1] * xt[0:1, :]
          + w1[:, 1:2] * xt[1:2, :]
          + b1_ref[...])                                   # (64, TILE_B)
    h1 = jnp.maximum(h1, 0.0)

    # Layer 2 on the MXU: explicit bf16 operands, f32 accumulation -> one MXU pass.
    h2 = jnp.dot(w2_ref[...], h1.astype(jnp.bfloat16),
                 preferred_element_type=jnp.float32)       # (64, TILE_B)
    h2 = jnp.maximum(h2 + b2_ref[...], 0.0)

    # Layer 3: N=1 output as an exact f32 elementwise mul + cross-sublane reduce
    # (XLU); keeps the output lane-dense for unmasked stores.
    o = jnp.sum(h2 * w3_ref[...], axis=0, keepdims=True)   # (1, TILE_B)
    o_ref[...] = (o + b3_ref[0, 0]).astype(o_ref.dtype)


def neural_network_forward(x, params):
    """x: (B, 2) float32; params in PyTorch-native layout:
       w1 (64,2), b1 (64,), w2 (64,64), b2 (64,), w3 (1,64), b3 (1,)."""
    w1, b1 = params["w1"], params["b1"]
    w2, b2 = params["w2"], params["b2"]
    w3, b3 = params["w3"], params["b3"]

    B = x.shape[0]

    # Derive the batch tile from B: cap columns per step at TILE_CAP, and use at
    # least 2 grid steps for non-trivial batches so the "parallel" axis can shard
    # across TensorCores (v7x megacore); round the tile to the 128-lane width.
    grid_n = max(1, pl.cdiv(B, TILE_CAP))
    if B > 2 * LANE:
        grid_n = max(grid_n, 2)
    tile_b = int(_round_up(pl.cdiv(B, grid_n), LANE))
    Bp = tile_b * grid_n

    # Single fused transpose + zero-pad (batch -> lanes); no zeros+scatter pass.
    xt = jnp.pad(x.astype(jnp.float32).T, ((0, 0), (0, Bp - B)))

    b1c = b1.reshape(HIDDEN, 1).astype(jnp.float32)
    b2c = b2.reshape(HIDDEN, 1).astype(jnp.float32)
    w3c = w3.reshape(HIDDEN, 1).astype(jnp.float32)
    b3s = b3.reshape(1, 1).astype(jnp.float32)
    w2b = w2.astype(jnp.bfloat16)        # explicit bf16 MXU operand (half the DMA)

    out_t = pl.pallas_call(
        mlp_kernel,
        out_shape=jax.ShapeDtypeStruct((1, Bp), jnp.float32),
        grid=(grid_n,),
        in_specs=[
            pl.BlockSpec((IN_DIM, tile_b), lambda i: (0, i)),       # x^T tile
            pl.BlockSpec((HIDDEN, IN_DIM), lambda i: (0, 0)),       # W1 resident
            pl.BlockSpec((HIDDEN, 1), lambda i: (0, 0)),            # b1 resident
            pl.BlockSpec((HIDDEN, HIDDEN), lambda i: (0, 0)),       # W2 (bf16) resident
            pl.BlockSpec((HIDDEN, 1), lambda i: (0, 0)),            # b2 resident
            pl.BlockSpec((HIDDEN, 1), lambda i: (0, 0)),            # W3 resident
            pl.BlockSpec(memory_space=pltpu.MemorySpace.SMEM),      # b3 scalar
        ],
        out_specs=pl.BlockSpec((1, tile_b), lambda i: (0, i)),
        compiler_params=pltpu.CompilerParams(
            dimension_semantics=("parallel",),
            vmem_limit_bytes=32 * 1024 * 1024),
    )(xt, w1.astype(jnp.float32), b1c, w2b, b2c, w3c, b3s)

    # Un-transpose and drop the batch padding: (1, Bp) -> (B, 1).
    return out_t[0, :B].reshape(B, 1)


def init_params(key):
    """Parameter init in PyTorch-native shapes (weight is (out, in))."""
    k1, k2, k3, k4, k5, k6 = jax.random.split(key, 6)

    def uniform(k, shape, fan_in):
        bound = 1.0 / jnp.sqrt(jnp.float32(fan_in))
        return jax.random.uniform(k, shape, jnp.float32, -bound, bound)

    return {
        "w1": uniform(k1, (HIDDEN, IN_DIM), IN_DIM),   # layer1.weight
        "b1": uniform(k2, (HIDDEN,), IN_DIM),          # layer1.bias
        "w2": uniform(k3, (HIDDEN, HIDDEN), HIDDEN),   # layer2.weight
        "b2": uniform(k4, (HIDDEN,), HIDDEN),          # layer2.bias
        "w3": uniform(k5, (1, HIDDEN), HIDDEN),        # layer3.weight
        "b3": uniform(k6, (1,), HIDDEN),               # layer3.bias
    }


def reference_forward(x, p, matmul_dtype=jnp.float32):
    """Pure-JAX reference.  matmul_dtype=bf16 mirrors the kernel's explicit
    layer-2 MXU precision; f32 (with HIGHEST precision) is the exact reference."""
    hp = jax.lax.Precision.HIGHEST
    h1 = jnp.maximum(jnp.dot(x, p["w1"].T, precision=hp) + p["b1"], 0.0)
    h2 = jnp.dot(h1.astype(matmul_dtype), p["w2"].T.astype(matmul_dtype),
                 preferred_element_type=jnp.float32, precision=hp)
    h2 = jnp.maximum(h2 + p["b2"], 0.0)
    return jnp.dot(h2, p["w3"].T, precision=hp) + p["b3"]


if __name__ == "__main__":
    key = jax.random.PRNGKey(0)
    k_params, k_x1, k_x2 = jax.random.split(key, 3)
    params = init_params(k_params)

    fwd = jax.jit(neural_network_forward)

    # Small demo batch (module spec: 2 input features, 1 output).
    x_small = jax.random.normal(k_x1, (8, IN_DIM), dtype=jnp.float32)
    out_small = jax.block_until_ready(fwd(x_small, params))
    assert out_small.shape == (8, 1)
    # Tight check against the precision-matched (bf16 layer-2) reference, loose
    # check against the exact f32 reference (kernel uses bf16 on the MXU).
    ref_small_bf16 = reference_forward(x_small, params, matmul_dtype=jnp.bfloat16)
    ref_small_f32 = reference_forward(x_small, params, matmul_dtype=jnp.float32)
    assert jnp.allclose(out_small, ref_small_bf16, atol=2e-3, rtol=2e-3)
    assert jnp.allclose(out_small, ref_small_f32, atol=5e-2, rtol=5e-2)

    # Non-multiple batch to exercise the multi-step grid, padding and slicing.
    x_big = jax.random.normal(k_x2, (384, IN_DIM), dtype=jnp.float32)
    out_big = jax.block_until_ready(fwd(x_big, params))
    assert out_big.shape == (384, 1)
    ref_big_bf16 = reference_forward(x_big, params, matmul_dtype=jnp.bfloat16)
    assert jnp.allclose(out_big, ref_big_bf16, atol=2e-3, rtol=2e-3)

    print("KERNEL_OK")
</pallas_src>

<mosaic_0001>
module attributes {stable_mosaic.version = 11 : i64} {
  func.func @mlp_kernel(%arg0: i32, %arg1: memref<2x128xf32, #tpu.memory_space<vmem>>, %arg2: memref<64x2xf32, #tpu.memory_space<vmem>>, %arg3: memref<64x1xf32, #tpu.memory_space<vmem>>, %arg4: memref<64x64xbf16, #tpu.memory_space<vmem>>, %arg5: memref<64x1xf32, #tpu.memory_space<vmem>>, %arg6: memref<64x1xf32, #tpu.memory_space<vmem>>, %arg7: memref<1x1xf32, #tpu.memory_space<smem>>, %arg8: memref<1x128xf32, #tpu.memory_space<vmem>>) attributes {dimension_semantics = [#tpu.dimension_semantics<parallel>], iteration_bounds = array<i64: 1>, scalar_prefetch = 0 : i64, scratch_operands = 0 : i64, tpu.core_type = #tpu.core_type<tc>, window_params = [{transform_indices = @transform_0, window_bounds = array<i64: 2, 128>}, {pipeline_mode = #tpu.pipeline_mode<synchronous>, transform_indices = @transform_1, window_bounds = array<i64: 64, 2>}, {pipeline_mode = #tpu.pipeline_mode<synchronous>, transform_indices = @transform_2, window_bounds = array<i64: 64, 1>}, {pipeline_mode = #tpu.pipeline_mode<synchronous>, transform_indices = @transform_3, window_bounds = array<i64: 64, 64>}, {pipeline_mode = #tpu.pipeline_mode<synchronous>, transform_indices = @transform_4, window_bounds = array<i64: 64, 1>}, {pipeline_mode = #tpu.pipeline_mode<synchronous>, transform_indices = @transform_5, window_bounds = array<i64: 64, 1>}, {transform_indices = @transform_6, window_bounds = array<i64: 1, 1>}, {transform_indices = @transform_7, window_bounds = array<i64: 1, 128>}]} {
    %c0 = arith.constant 0 : index
    %c0_0 = arith.constant 0 : index
    %0 = vector.load %arg1[%c0, %c0_0] : memref<2x128xf32, #tpu.memory_space<vmem>>, vector<2x128xf32>
    %c0_1 = arith.constant 0 : index
    %c0_2 = arith.constant 0 : index
    %1 = vector.load %arg2[%c0_1, %c0_2] : memref<64x2xf32, #tpu.memory_space<vmem>>, vector<64x2xf32>
    %2 = vector.extract_strided_slice %1 {offsets = [0, 0], sizes = [64, 1], strides = [1, 1]} : vector<64x2xf32> to vector<64x1xf32>
    %3 = vector.extract_strided_slice %0 {offsets = [0, 0], sizes = [1, 128], strides = [1, 1]} : vector<2x128xf32> to vector<1x128xf32>
    %4 = vector.broadcast %2 : vector<64x1xf32> to vector<64x128xf32>
    %5 = vector.broadcast %3 : vector<1x128xf32> to vector<64x128xf32>
    %6 = arith.mulf %4, %5 : vector<64x128xf32>
    %7 = vector.extract_strided_slice %1 {offsets = [0, 1], sizes = [64, 1], strides = [1, 1]} : vector<64x2xf32> to vector<64x1xf32>
    %8 = vector.extract_strided_slice %0 {offsets = [1, 0], sizes = [1, 128], strides = [1, 1]} : vector<2x128xf32> to vector<1x128xf32>
    %9 = vector.broadcast %7 : vector<64x1xf32> to vector<64x128xf32>
    %10 = vector.broadcast %8 : vector<1x128xf32> to vector<64x128xf32>
    %11 = arith.mulf %9, %10 : vector<64x128xf32>
    %12 = arith.addf %6, %11 : vector<64x128xf32>
    %c0_3 = arith.constant 0 : index
    %c0_4 = arith.constant 0 : index
    %13 = vector.load %arg3[%c0_3, %c0_4] : memref<64x1xf32, #tpu.memory_space<vmem>>, vector<64x1xf32>
    %14 = vector.broadcast %13 : vector<64x1xf32> to vector<64x128xf32>
    %15 = arith.addf %12, %14 : vector<64x128xf32>
    %cst = arith.constant 0.000000e+00 : f32
    %16 = vector.broadcast %cst : f32 to vector<64x128xf32>
    %17 = arith.maximumf %15, %16 : vector<64x128xf32>
    %c0_5 = arith.constant 0 : index
    %c0_6 = arith.constant 0 : index
    %18 = vector.load %arg4[%c0_5, %c0_6] : memref<64x64xbf16, #tpu.memory_space<vmem>>, vector<64x64xbf16>
    %19 = arith.truncf %17 : vector<64x128xf32> to vector<64x128xbf16>
    %cst_7 = arith.constant dense<0.000000e+00> : vector<64x128xf32>
    %20 = tpu.matmul %18, %19, %cst_7 {dimension_numbers = #tpu.dot_dimension_numbers<[1], [0], [0], [1], [0, 0, 1, 1], [], []>} : vector<64x64xbf16>, vector<64x128xbf16>, vector<64x128xf32> -> vector<64x128xf32>
    %c0_8 = arith.constant 0 : index
    %c0_9 = arith.constant 0 : index
    %21 = vector.load %arg5[%c0_8, %c0_9] : memref<64x1xf32, #tpu.memory_space<vmem>>, vector<64x1xf32>
    %22 = vector.broadcast %21 : vector<64x1xf32> to vector<64x128xf32>
    %23 = arith.addf %20, %22 : vector<64x128xf32>
    %cst_10 = arith.constant 0.000000e+00 : f32
    %24 = vector.broadcast %cst_10 : f32 to vector<64x128xf32>
    %25 = arith.maximumf %23, %24 : vector<64x128xf32>
    %c0_11 = arith.constant 0 : index
    %c0_12 = arith.constant 0 : index
    %26 = vector.load %arg6[%c0_11, %c0_12] : memref<64x1xf32, #tpu.memory_space<vmem>>, vector<64x1xf32>
    %27 = vector.broadcast %26 : vector<64x1xf32> to vector<64x128xf32>
    %28 = arith.mulf %25, %27 : vector<64x128xf32>
    %cst_13 = arith.constant dense<0.000000e+00> : vector<128xf32>
    %29 = vector.multi_reduction <add>, %28, %cst_13 [0] : vector<64x128xf32> to vector<128xf32>
    %30 = vector.shape_cast %29 : vector<128xf32> to vector<1x128xf32>
    %c0_14 = arith.constant 0 : index
    %c0_15 = arith.constant 0 : index
    %31 = memref.load %arg7[%c0_14, %c0_15] : memref<1x1xf32, #tpu.memory_space<smem>>
    %32 = vector.broadcast %31 : f32 to vector<1x128xf32>
    %33 = arith.addf %30, %32 : vector<1x128xf32>
    %c0_16 = arith.constant 0 : index
    %c0_17 = arith.constant 0 : index
    %34 = vector.load %arg8[%c0_16, %c0_17] : memref<1x128xf32, #tpu.memory_space<vmem>>, vector<1x128xf32>
    tpu.vector_store %arg8[%c0_16, %c0_17], %33 {strides = array<i32>} : memref<1x128xf32, #tpu.memory_space<vmem>>, vector<1x128xf32>,
    return
  }
  func.func @transform_0(%arg0: i32) -> (i32, i32) {
    %c0_i32 = arith.constant 0 : i32
    %c0_i32_0 = arith.constant 0 : i32
    return %c0_i32, %arg0 : i32, i32
  }
  func.func @transform_1(%arg0: i32) -> (i32, i32) {
    %c0_i32 = arith.constant 0 : i32
    %c0_i32_0 = arith.constant 0 : i32
    %c0_i32_1 = arith.constant 0 : i32
    return %c0_i32, %c0_i32_0 : i32, i32
  }
  func.func @transform_2(%arg0: i32) -> (i32, i32) {
    %c0_i32 = arith.constant 0 : i32
    %c0_i32_0 = arith.constant 0 : i32
    %c0_i32_1 = arith.constant 0 : i32
    return %c0_i32, %c0_i32_0 : i32, i32
  }
  func.func @transform_3(%arg0: i32) -> (i32, i32) {
    %c0_i32 = arith.constant 0 : i32
    %c0_i32_0 = arith.constant 0 : i32
    %c0_i32_1 = arith.constant 0 : i32
    return %c0_i32, %c0_i32_0 : i32, i32
  }
  func.func @transform_4(%arg0: i32) -> (i32, i32) {
    %c0_i32 = arith.constant 0 : i32
    %c0_i32_0 = arith.constant 0 : i32
    %c0_i32_1 = arith.constant 0 : i32
    return %c0_i32, %c0_i32_0 : i32, i32
  }
  func.func @transform_5(%arg0: i32) -> (i32, i32) {
    %c0_i32 = arith.constant 0 : i32
    %c0_i32_0 = arith.constant 0 : i32
    %c0_i32_1 = arith.constant 0 : i32
    return %c0_i32, %c0_i32_0 : i32, i32
  }
  func.func @transform_6(%arg0: i32) -> (i32, i32) {
    %c0_i32 = arith.constant 0 : i32
    %c0_i32_0 = arith.constant 0 : i32
    %c0_i32_1 = arith.constant 0 : i32
    return %c0_i32, %c0_i32_0 : i32, i32
  }
  func.func @transform_7(%arg0: i32) -> (i32, i32) {
    %c0_i32 = arith.constant 0 : i32
    %c0_i32_0 = arith.constant 0 : i32
    return %c0_i32, %arg0 : i32, i32
  }
}

</mosaic_0001>

<bundles_post_ra>
// kernel: neural_network_forward.1
= control target key start
LH: loop header
LB: loop body
LE: loop exit
PB: predicated region body
PF: predicated region fallthrough
CT: control target
= control target key end

     0   :  { %v504_v0 = vmov 1   ;;  %v505_v7 = vmov 0   ;;  %vm285_vm0 = vcmask 523264   ;;  %v77_v38 = vlaneseq  ;;  %s670_s1 = inlined_call_operand.vmem [shape: f32[64,2], index: 1, kind: input, shape index: {}]   ;;  %s671_s2 = inlined_call_operand.vmem [shape: f32[64,1], index: 2, kind: input, shape index: {}]   ;;  %s672_s4 = inlined_call_operand.vmem [shape: f32[64,1], index: 4, kind: input, shape index: {}]   ;;  %s673_s5 = inlined_call_operand.vmem [shape: f32[64,1], index: 5, kind: input, shape index: {}]   ;;  %s674_s3 = inlined_call_operand.vmem [shape: bf16[64,64], index: 3, kind: input, shape index: {}]   ;;  %s675_s0 = inlined_call_operand.vmem [shape: f32[2,128], index: 0, kind: input, shape index: {}]   ;;  %s676_s6 = inlined_call_operand.<no memory space> [shape: f32[1,1], index: 6, kind: input, shape index: {}]   ;;  %s677_s7 = inlined_call_operand.vmem [shape: f32[1,128], index: 7, kind: output, shape index: {}]  }
   0x1   :  { %492 = vset.pattern.permute.xlu0 %v504_v0  ;;  %490 = vset.pattern.permute.xlu1 %v504_v0  ;;  %v31_v1 = vld [vmem:[%s670_s1 + $0x10] sm:$0xff]  ;;  %v29_v2 = vld [vmem:[%s670_s1] sm:$0xff]  ;;  %v30_v4 = vld [vmem:[%s670_s1 + $0x8] sm:$0xff] }
   0x2   :  { %98 = vperm.xlu0 %492, %v31_v1   ;;  %90 = vperm.xlu1 %490, %v29_v2   ;;  %v33_v3 = vld [vmem:[%s670_s1 + $0x20] sm:$0xff]  ;;  %v35_v5 = vld [vmem:[%s670_s1 + $0x30] sm:$0xff]  ;;  %v32_v6 = vld [vmem:[%s670_s1 + $0x18] sm:$0xff]  ;;  %v78_v41 = vshrl.u32 %v77_v38, 7 }
   0x3   :  { %v141_v8 = vld [vmem:[%s671_s2] sm:$0xff]  ;;  %v142_v9 = vld [vmem:[%s671_s2 + $0x8] sm:$0xff]  ;;  %v144_v11 = vld [vmem:[%s671_s2 + $0x18] sm:$0xff] }
   0x4   :  { %v34_v10 = vld [vmem:[%s670_s1 + $0x28] sm:$0xff]  ;;  %v217_v13 = vld [vmem:[%s672_s4] sm:$0xff]  ;;  %v143_v14 = vld [vmem:[%s671_s2 + $0x10] sm:$0xff]  ;;  %v123_v44 = vsub.s32 1, %v78_v41  ;;  %v79_v45 = vsub.s32 0, %v78_v41 }
   0x5   :  { %v146_v12 = vld [vmem:[%s671_s2 + $0x28] sm:$0xff]  ;;  %v219_v15 = vld [vmem:[%s672_s4 + $0x10] sm:$0xff]  ;;  %v371_v16 = vld [vmem:[%s673_s5] sm:$0xff] }
   0x6   :  { %106 = vperm.xlu0 %492, %v33_v3   ;;  %94 = vperm.xlu1 %490, %v30_v4   ;;  %v36_v17 = vld [vmem:[%s670_s1 + $0x38] sm:$0xff]  ;;  %v221_v18 = vld [vmem:[%s672_s4 + $0x20] sm:$0xff]  ;;  %v222_v19 = vld [vmem:[%s672_s4 + $0x28] sm:$0xff] }
   0x7   :  { %v145_v20 = vld [vmem:[%s671_s2 + $0x20] sm:$0xff]  ;;  %v223_v21 = vld [vmem:[%s672_s4 + $0x30] sm:$0xff]  ;;  %v224_v23 = vld [vmem:[%s672_s4 + $0x38] sm:$0xff] }
   0x8   :  { %v147_v22 = vld [vmem:[%s671_s2 + $0x30] sm:$0xff]  ;;  %v148_v24 = vld [vmem:[%s671_s2 + $0x38] sm:$0xff]  ;;  %v218_v26 = vld [vmem:[%s672_s4 + $0x8] sm:$0xff] }
   0x9   :  { %v377_v25 = vld [vmem:[%s673_s5 + $0x30] sm:$0xff]  ;;  %v220_v27 = vld [vmem:[%s672_s4 + $0x18] sm:$0xff]  ;;  %v500_v28 = vld [vmem:[%s674_s3] sm:$0xff]  }
   0xa   :  { %114 = vperm.xlu0 %492, %v35_v5   ;;  %491 = vset.pattern.permute.xlu1 %v505_v7  ;;  %v501_v29 = vld [vmem:[%s674_s3 + $0x10] sm:$0xff]   ;;  %v372_v30 = vld [vmem:[%s673_s5 + $0x8] sm:$0xff]  ;;  %v374_v32 = vld [vmem:[%s673_s5 + $0x18] sm:$0xff] }
   0xb   :  { %54 = vperm.xlu1 %491, %v32_v6   ;;  %472 = vmatprep.mubr.msk.bf16.mxu0 %vm285_vm0, %v500_v28  ;;  %v373_v31 = vld [vmem:[%s673_s5 + $0x10] sm:$0xff]  ;;  %v375_v33 = vld [vmem:[%s673_s5 + $0x20] sm:$0xff]  ;;  %v376_v34 = vld [vmem:[%s673_s5 + $0x28] sm:$0xff] }
   0xc   :  { %476 = vmatprep.mubr.msk.bf16.mxu1 %vm285_vm0, %v501_v29  ;;  %v378_v35 = vld [vmem:[%s673_s5 + $0x38] sm:$0xff]  ;;  %v28_v46 = vld [vmem:[%s675_s0] sm:$0x3] }
   0xd   :  { %v124_v49 = vrot.slane %v28_v46, %v123_v44  ;;  %v80_v50 = vrot.slane %v28_v46, %v79_v45 }
   0xe   :  { %497 = vset.pattern.permute.xlu0 %v505_v7 }
   0xf   :  { %39 = vperm.xlu0 %497, %v29_v2   ;;  %493 = vset.pattern.permute.xlu1 %v504_v0 }
  0x10   :  { %102 = vperm.xlu1 %493, %v32_v6  }
  0x13   :  { %44 = vperm.xlu0 %497, %v30_v4  }
  0x14   :  { %494 = vset.pattern.permute.xlu1 %v505_v7 }
  0x15   :  { %151 = vperm.xlu1 %494, %v141_v8  }
  0x17   :  { %49 = vperm.xlu0 %497, %v31_v1  }
  0x19   :  { %59 = vperm.xlu1 %494, %v33_v3  }
  0x1b   :  { %156 = vperm.xlu0 %497, %v142_v9  }
  0x1d   :  { %64 = vperm.xlu1 %494, %v34_v10  }
  0x1f   :  { %166 = vperm.xlu0 %497, %v144_v11  }
  0x21   :  { %495 = vset.pattern.permute.xlu1 %v504_v0 }
  0x22   :  { %110 = vperm.xlu1 %495, %v34_v10  }
  0x23   :  { %176 = vperm.xlu0 %497, %v146_v12  }
  0x26   :  { %496 = vset.pattern.permute.xlu1 %v505_v7 }
  0x27   :  { %227 = vperm.xlu0 %497, %v217_v13   ;;  %161 = vperm.xlu1 %496, %v143_v14  }
  0x2b   :  { %237 = vperm.xlu0 %497, %v219_v15   ;;  %69 = vperm.xlu1 %496, %v35_v5  }
  0x2f   :  { %381 = vperm.xlu0 %497, %v371_v16   ;;  %74 = vperm.xlu1 %496, %v36_v17  }
  0x33   :  { %247 = vperm.xlu0 %497, %v221_v18   ;;  %498 = vset.pattern.permute.xlu1 %v504_v0 }
  0x34   :  { %118 = vperm.xlu1 %498, %v36_v17  }
  0x37   :  { %252 = vperm.xlu0 %497, %v222_v19  }
  0x38   :  { %499 = vset.pattern.permute.xlu1 %v505_v7 }
  0x39   :  { %171 = vperm.xlu1 %499, %v145_v20  }
  0x3b   :  { %257 = vperm.xlu0 %497, %v223_v21  }
  0x3d   :  { %181 = vperm.xlu1 %499, %v147_v22  }
  0x3f   :  { %262 = vperm.xlu0 %497, %v224_v23  }
  0x41   :  { %186 = vperm.xlu1 %499, %v148_v24  }
  0x43   :  { %411 = vperm.xlu0 %497, %v377_v25  }
  0x45   :  { %232 = vperm.xlu1 %499, %v218_v26  }
  0x49   :  { %242 = vperm.xlu1 %499, %v220_v27  }
  0x4d   :  { %386 = vperm.xlu1 %499, %v372_v30  }
  0x51   :  { %391 = vperm.xlu1 %499, %v373_v31  }
  0x55   :  { %396 = vperm.xlu1 %499, %v374_v32  }
  0x59   :  { %401 = vperm.xlu1 %499, %v375_v33  }
  0x5d   :  { %406 = vperm.xlu1 %499, %v376_v34  }
  0x61   :  { %416 = vperm.xlu1 %499, %v378_v35  }
  0x81   :  { %v91_v36 = vpop.permute.xlu1 %90  ;;  %v99_v37 = vpop.permute.xlu0 %98 }
  0x82   :  { %v125_v54 = vmul.f32 %v124_v49, %v91_v36  ;;  %v127_v5 = vmul.f32 %v124_v49, %v99_v37 }
  0x85   :  { %v95_v39 = vpop.permute.xlu1 %94  ;;  %v107_v40 = vpop.permute.xlu0 %106 }
  0x86   :  { %v126_v57 = vmul.f32 %v124_v49, %v95_v39  ;;  %v129_v22 = vmul.f32 %v124_v49, %v107_v40 }
  0x89   :  { %v650_v42 = vpop.permute.xlu0 %114 }
  0x8a   :  { %v55_v43 = vpop.permute.xlu1 %54  ;;  %v131_v32 = vmul.f32 %v124_v49, %v650_v42  ;;  %v502_v42 = vld [vmem:[%s674_s3 + $0x8] sm:$0xff]  }
  0x8b   :  { %v84_v6 = vmul.f32 %v80_v50, %v55_v43 }
  0x8e   :  { %v40_v47 = vpop.permute.xlu0 %39 }
  0x8f   :  { %v103_v48 = vpop.permute.xlu1 %102  ;;  %v81_v52 = vmul.f32 %v80_v50, %v40_v47 }
  0x90   :  { %v128_v3 = vmul.f32 %v124_v49, %v103_v48  ;;  %v503_v48 = vld [vmem:[%s674_s3 + $0x18] sm:$0xff]  }
  0x91   :  { %v133_v58 = vadd.f32 %v125_v54, %v81_v52 }
  0x92   :  { %v45_v51 = vpop.permute.xlu0 %44  ;;  %v136_v10 = vadd.f32 %v128_v3, %v84_v6 }
  0x93   :  { %v82_v55 = vmul.f32 %v80_v50, %v45_v51 }
  0x94   :  { %v152_v53 = vpop.permute.xlu1 %151 }
  0x95   :  { %v189_v60 = vadd.f32 %v152_v53, %v133_v58  ;;  %v134_v61 = vadd.f32 %v126_v57, %v82_v55 }
  0x96   :  { %v50_v56 = vpop.permute.xlu0 %49 }
  0x97   :  { %v197_v1 = vmax.f32 %v189_v60, 0.0  ;;  %v83_v7 = vmul.f32 %v80_v50, %v50_v56 }
  0x98   :  { %v60_v59 = vpop.permute.xlu1 %59 }
  0x99   :  { %v135_v12 = vadd.f32 %v127_v5, %v83_v7  ;;  %v85_v23 = vmul.f32 %v80_v50, %v60_v59 }
  0x9a   :  { %v157_v62 = vpop.permute.xlu0 %156 }
  0x9b   :  { %v190_v63 = vadd.f32 %v157_v62, %v134_v61  ;;  %v137_v28 = vadd.f32 %v129_v22, %v85_v23 }
  0x9c   :  { %v65_v0 = vpop.permute.xlu1 %64 }
  0x9d   :  { %v198_v2 = vmax.f32 %v190_v63, 0.0  ;;  %v86_v21 = vmul.f32 %v80_v50, %v65_v0 }
  0x9e   :  { %v167_v9 = vpop.permute.xlu0 %166 }
  0x9f   :  { %v213_v4 = vpack.c.bf16 %v198_v2, %v197_v1  ;;  %v192_v11 = vadd.f32 %v167_v9, %v136_v10 }
  0xa1   :  { %v111_v8 = vpop.permute.xlu1 %110  ;;  %464 = vmatprep.subr.bf16.mxu0 %v213_v4  ;;  %480 = vmatprep.subr.bf16.mxu1 %v213_v4  ;;  %v200_v15 = vmax.f32 %v192_v11, 0.0 }
  0xa2   :  { %465 = vmatpush3.bf16.msra.mxu0 %v213_v4  ;;  %484 = vmatpush3.bf16.msra.mxu1 %v213_v4  ;;  %v130_v20 = vmul.f32 %v124_v49, %v111_v8  ;;  %v177_v26 = vpop.permute.xlu0 %176 }
  0xa4   :  { %v138_v24 = vadd.f32 %v130_v20, %v86_v21 }
  0xa6   :  { %v162_v13 = vpop.permute.xlu1 %161  ;;  %v194_v27 = vadd.f32 %v177_v26, %v138_v24 }
  0xa7   :  { %v191_v14 = vadd.f32 %v162_v13, %v135_v12 }
  0xa8   :  { %v202_v33 = vmax.f32 %v194_v27, 0.0 }
  0xa9   :  { %v199_v16 = vmax.f32 %v191_v14, 0.0 }
  0xaa   :  { %v70_v17 = vpop.permute.xlu1 %69 }
  0xab   :  { %v214_v18 = vpack.c.bf16 %v200_v15, %v199_v16  ;;  %v87_v30 = vmul.f32 %v80_v50, %v70_v17 }
  0xad   :  { %466 = vmatprep.subr.bf16.mxu0 %v214_v18  ;;  %481 = vmatprep.subr.bf16.mxu1 %v214_v18  ;;  %v139_v39 = vadd.f32 %v131_v32, %v87_v30 }
  0xae   :  { %v75_v19 = vpop.permute.xlu1 %74  ;;  %467 = vmatpush3.bf16.msra.mxu0 %v214_v18  ;;  %485 = vmatpush3.bf16.msra.mxu1 %v214_v18 }
  0xaf   :  { %v88_v37 = vmul.f32 %v80_v50, %v75_v19 }
  0xb3   :  { %v119_v25 = vpop.permute.xlu1 %118 }
  0xb4   :  { %v132_v34 = vmul.f32 %v124_v49, %v119_v25  ;;  %v228_v49 = vpop.permute.xlu0 %227 }
  0xb6   :  { %v140_v40 = vadd.f32 %v132_v34, %v88_v37 }
  0xb8   :  { %v172_v29 = vpop.permute.xlu1 %171  ;;  %v238_v51 = vpop.permute.xlu0 %237 }
  0xb9   :  { %v193_v31 = vadd.f32 %v172_v29, %v137_v28 }
  0xbb   :  { %v201_v35 = vmax.f32 %v193_v31, 0.0 }
  0xbc   :  { %v182_v36 = vpop.permute.xlu1 %181  ;;  %v382_v53 = vpop.permute.xlu0 %381 }
  0xbd   :  { %v215_v38 = vpack.c.bf16 %v202_v33, %v201_v35  ;;  %v195_v41 = vadd.f32 %v182_v36, %v139_v39 }
  0xbf   :  { %468 = vmatprep.subr.bf16.mxu0 %v215_v38  ;;  %482 = vmatprep.subr.bf16.mxu1 %v215_v38  ;;  %v203_v45 = vmax.f32 %v195_v41, 0.0 }
  0xc0   :  { %v187_v43 = vpop.permute.xlu1 %186  ;;  %469 = vmatpush3.bf16.msra.mxu0 %v215_v38  ;;  %486 = vmatpush3.bf16.msra.mxu1 %v215_v38  ;;  %v248_v55 = vpop.permute.xlu0 %247 }
  0xc1   :  { %v196_v44 = vadd.f32 %v187_v43, %v140_v40 }
  0xc3   :  { %v204_v46 = vmax.f32 %v196_v44, 0.0 }
  0xc4   :  { %v233_v50 = vpop.permute.xlu1 %232  ;;  %v253_v57 = vpop.permute.xlu0 %252 }
  0xc5   :  { %v216_v47 = vpack.c.bf16 %v204_v46, %v203_v45  ;;  %v441_v46 = vstv %s676_s6 }
  0xc7   :  { %470 = vmatprep.subr.bf16.mxu0 %v216_v47  ;;  %483 = vmatprep.subr.bf16.mxu1 %v216_v47 }
  0xc8   :  { %471 = vmatpush3.bf16.msra.mxu0 %v216_v47  ;;  %487 = vmatpush3.bf16.msra.mxu1 %v216_v47  ;;  %v243_v52 = vpop.permute.xlu1 %242  ;;  %v258_v8 = vpop.permute.xlu0 %257 }
  0xcb   :  { %473 = vmatmul.mubr.msk.bf16.vlgmr.msra.gmra.mrb[0].mxu0 %vm285_vm0, %v502_v42  ;;  %477 = vmatmul.mubr.msk.bf16.vlgmr.msra.gmra.mrb[0].mxu1 %vm285_vm0, %v503_v48 }
  0xcc   :  { %v387_v54 = vpop.permute.xlu1 %386  ;;  %v263_v21 = vpop.permute.xlu0 %262 }
  0xd0   :  { %v392_v56 = vpop.permute.xlu1 %391  ;;  %v412_v33 = vpop.permute.xlu0 %411 }
  0xd4   :  { %v397_v58 = vpop.permute.xlu1 %396 }
  0xd8   :  { %v402_v12 = vpop.permute.xlu1 %401 }
  0xdc   :  { %v407_v26 = vpop.permute.xlu1 %406 }
  0xe0   :  { %v417_v36 = vpop.permute.xlu1 %416 }
 0x19e   :  { %v474_v59 = vpop.f32.mrb[0].mxu0  ;;  %v478_v60 = vpop.f32.mrb[0].mxu1 }
 0x19f   :  { %v332_v61 = vpop.f32.mrb[1].mxu0  ;;  %v348_v62 = vpop.f32.mrb[1].mxu1  ;;  %v341_v63 = vadd.f32 %v474_v59, %v238_v51  ;;  %v357_v18 = vadd.f32 %v478_v60, %v258_v8 }
 0x1a0   :  { %v333_v0 = vadd.f32 %v332_v61, %v228_v49  ;;  %v475_v1 = vpop.f32.mrb[2].mxu0  ;;  %v479_v2 = vpop.f32.mrb[2].mxu1  ;;  %v349_v10 = vadd.f32 %v348_v62, %v248_v55 }
 0x1a1   :  { %v335_v3 = vpop.f32.mrb[3].mxu0  ;;  %v351_v4 = vpop.f32.mrb[3].mxu1  ;;  %v344_v6 = vadd.f32 %v475_v1, %v243_v52  ;;  %v365_v9 = vmax.f32 %v341_v63, 0.0  ;;  %v360_v23 = vadd.f32 %v479_v2, %v263_v21  ;;  %v369_v27 = vmax.f32 %v357_v18, 0.0 }
 0x1a2   :  { %v363_v5 = vmax.f32 %v333_v0, 0.0  ;;  %v336_v7 = vadd.f32 %v335_v3, %v233_v50  ;;  %v352_v16 = vadd.f32 %v351_v4, %v253_v57  ;;  %v367_v19 = vmax.f32 %v349_v10, 0.0 }
 0x1a3   :  { %v366_v14 = vmax.f32 %v344_v6, 0.0  ;;  %v421_v17 = vmul.f32 %v392_v56, %v365_v9  ;;  %v370_v30 = vmax.f32 %v360_v23, 0.0  ;;  %v425_v34 = vmul.f32 %v412_v33, %v369_v27 }
 0x1a4   :  { %v364_v11 = vmax.f32 %v336_v7, 0.0  ;;  %v419_v13 = vmul.f32 %v382_v53, %v363_v5  ;;  %v368_v25 = vmax.f32 %v352_v16, 0.0  ;;  %v423_v28 = vmul.f32 %v402_v12, %v367_v19 }
 0x1a5   :  { %v422_v22 = vmul.f32 %v397_v58, %v366_v14  ;;  %v426_v37 = vmul.f32 %v417_v36, %v370_v30 }
 0x1a6   :  { %v420_v15 = vmul.f32 %v387_v54, %v364_v11  ;;  %v424_v31 = vmul.f32 %v407_v26, %v368_v25 }
 0x1a8   :  { %v427_v20 = vadd.f32 %v420_v15, %v419_v13 }
 0x1aa   :  { %v428_v24 = vadd.f32 %v427_v20, %v421_v17 }
 0x1ac   :  { %v429_v29 = vadd.f32 %v428_v24, %v422_v22 }
 0x1ae   :  { %v430_v32 = vadd.f32 %v429_v29, %v423_v28 }
 0x1b0   :  { %v431_v35 = vadd.f32 %v430_v32, %v424_v31 }
 0x1b2   :  { %v432_v38 = vadd.f32 %v431_v35, %v425_v34 }
 0x1b4   :  { %v433_v39 = vadd.f32 %v432_v38, %v426_v37 }
 0x1b6   :  { %v434_v41 = vrot.slane %v433_v39, 4 }
 0x1b8   :  { %v435_v40 = vadd.f32 %v434_v41, %v433_v39 }
 0x1ba   :  { %v436_v43 = vrot.slane %v435_v40, 2 }
 0x1bc   :  { %v437_v44 = vadd.f32 %v436_v43, %v435_v40 }
 0x1be   :  { %v438_v45 = vrot.slane %v437_v44, 1 }
 0x1c0   :  { %v439_v47 = vadd.f32 %v438_v45, %v437_v44 }
 0x1c2   :  { %v442_v42 = vadd.f32 %v441_v46, %v439_v47 }
 0x1c4   :  { %443 = vst [vmem:[%s677_s7] sm:$0x1] %v442_v42 }

</bundles_post_ra>
